<compile_context>
chip_gen: v5e
topology: v5e:2x2
jax: 0.10.0
libtpu: 0.0.40
codegen_flags: <defaults>
</compile_context>

<pallas_src>
import math
import functools

import jax
import jax.numpy as jnp
from jax.experimental import pallas as pl
from jax.experimental.pallas import tpu as pltpu

HIDDEN = 128        # fixed by the module spec
LANE = 128          # TPU lane width; n_actions is padded up to this
TILE_B_MAX = 512    # max batch rows per grid step (review: 512-1024)
NEG_BIG = -1.0e30   # bias for padded action lanes -> softmax prob exactly 0


def actor_kernel(x_ref, w1_ref, w2_ref, w3_ref, b_ref, probs_ref):
    # Packed biases (f32): row 0 = b1, row 1 = b2, row 2 = b3 (pad lanes -1e30)
    b1 = b_ref[0:1, :]
    b2 = b_ref[1:2, :]
    b3 = b_ref[2:3, :]

    # Layer 1: cast activations to bf16 in-kernel (VPU op hidden under
    # DMA/MXU), f32 MXU accumulate.
    x = x_ref[...].astype(w1_ref.dtype)
    h1 = jnp.dot(x, w1_ref[...], preferred_element_type=jnp.float32)
    h1 = jnp.maximum(h1 + b1, 0.0)

    # Layer 2: Linear + ReLU
    h2 = jnp.dot(h1.astype(w2_ref.dtype), w2_ref[...],
                 preferred_element_type=jnp.float32)
    h2 = jnp.maximum(h2 + b2, 0.0)

    # Layer 3: logits over the full 128-lane (padded) action dim
    logits = jnp.dot(h2.astype(w3_ref.dtype), w3_ref[...],
                     preferred_element_type=jnp.float32)
    logits = logits + b3

    # Numerically-stable softmax; padded lanes have logit -1e30 -> prob 0.
    m = jnp.max(logits, axis=-1, keepdims=True)
    e = jnp.exp(logits - m)
    denom = jnp.sum(e, axis=-1, keepdims=True)
    probs_ref[...] = (e * pl.reciprocal(denom, approx=True)).astype(
        probs_ref.dtype)


def init_actor_params(key, n_observations, n_actions, hidden=HIDDEN):
    """torch.nn.Linear default init: U(-1/sqrt(fan_in), 1/sqrt(fan_in))."""
    def linear(k, fan_in, fan_out):
        kw, kb = jax.random.split(k)
        bound = 1.0 / math.sqrt(fan_in)
        # stored as (in, out) so the kernel does x @ W + b
        w = jax.random.uniform(kw, (fan_in, fan_out), jnp.float32, -bound, bound)
        b = jax.random.uniform(kb, (1, fan_out), jnp.float32, -bound, bound)
        return w, b

    k1, k2, k3 = jax.random.split(key, 3)
    w1, b1 = linear(k1, n_observations, hidden)
    w2, b2 = linear(k2, hidden, hidden)
    w3, b3 = linear(k3, hidden, n_actions)
    return (w1, b1, w2, b2, w3, b3)


def prepare_actor_params(params, compute_dtype=jnp.bfloat16):
    """One-time packing: bf16 weights, pad layer-3 to 128 lanes, pack biases
    into a single (8,128) f32 buffer (rows: b1, b2, b3-padded).

    Returns (array_tuple, n_actions); only the arrays go into the jitted call.
    """
    w1, b1, w2, b2, w3, b3 = params
    hidden = w1.shape[1]
    n_actions = w3.shape[1]
    assert hidden == HIDDEN, "module spec fixes hidden width to 128"
    assert 1 <= n_actions <= LANE, "n_actions must be in [1, 128]"

    pad = LANE - n_actions
    w3p = jnp.pad(w3, ((0, 0), (0, pad)))                       # zero weight cols
    b3p = jnp.pad(b3, ((0, 0), (0, pad)), constant_values=NEG_BIG)

    bias_pack = jnp.zeros((8, LANE), jnp.float32)
    bias_pack = bias_pack.at[0].set(b1[0])
    bias_pack = bias_pack.at[1].set(b2[0])
    bias_pack = bias_pack.at[2].set(b3p[0])

    arrays = (w1.astype(compute_dtype),
              w2.astype(compute_dtype),
              w3p.astype(compute_dtype),
              bias_pack)
    return arrays, n_actions


def _round_up(n, m):
    return ((n + m - 1) // m) * m


@functools.partial(jax.jit, static_argnames=("tile_b_max",))
def actor_forward(x, arrays, tile_b_max=TILE_B_MAX):
    """Fused Actor forward.

    Returns softmax probabilities of shape (B, 128) in f32.  Lanes
    [n_actions:] are exactly 0, so the full array parameterizes the same
    Categorical distribution as the original module (no post-kernel slice /
    extra HBM pass needed).
    """
    w1, w2, w3p, bias_pack = arrays
    B, n_obs = x.shape

    # Large batch tile (multiple of 8) amortizes per-step overhead and fills
    # the v6e/v7x 256-row MXU; clamp so tiny batches don't over-allocate.
    tile_b = min(tile_b_max, _round_up(B, 8))
    grid = (pl.cdiv(B, tile_b),)

    probs = pl.pallas_call(
        actor_kernel,
        out_shape=jax.ShapeDtypeStruct((B, LANE), jnp.float32),
        grid=grid,
        in_specs=[
            # batch-tiled activations (f32; cast to bf16 inside the kernel)
            pl.BlockSpec((tile_b, n_obs), lambda i: (i, 0)),
            # weights / packed biases: same block every step -> VMEM-resident
            pl.BlockSpec((n_obs, HIDDEN), lambda i: (0, 0)),
            pl.BlockSpec((HIDDEN, HIDDEN), lambda i: (0, 0)),
            pl.BlockSpec((HIDDEN, LANE), lambda i: (0, 0)),
            pl.BlockSpec((8, LANE), lambda i: (0, 0)),
        ],
        out_specs=pl.BlockSpec((tile_b, LANE), lambda i: (i, 0)),
        compiler_params=pltpu.CompilerParams(
            dimension_semantics=("parallel",)),
    )(x, w1, w2, w3p, bias_pack)

    return probs


def actor_forward_ref(x, params, compute_dtype=jnp.float32):
    """Pure-JAX reference (optionally with the same bf16 operand casts)."""
    w1, b1, w2, b2, w3, b3 = params

    def lin(h, w, b):
        return jnp.dot(h.astype(compute_dtype), w.astype(compute_dtype),
                       preferred_element_type=jnp.float32) + b

    h1 = jax.nn.relu(lin(x, w1, b1))
    h2 = jax.nn.relu(lin(h1, w2, b2))
    logits = lin(h2, w3, b3)
    return jax.nn.softmax(logits, axis=-1)


if __name__ == "__main__":
    key = jax.random.PRNGKey(0)
    k_params, k_x = jax.random.split(key)

    batch = 8
    n_observations = 32
    n_actions = 8

    params = init_actor_params(k_params, n_observations, n_actions)
    arrays, n_act = prepare_actor_params(params)   # done once, reused per call
    x = jax.random.normal(k_x, (batch, n_observations), dtype=jnp.float32)

    probs_full = actor_forward(x, arrays)          # (B, 128), pad lanes == 0
    probs_full = jax.block_until_ready(probs_full)

    # Test-time only: compare the real-action lanes against references.
    probs = probs_full[:, :n_act]
    ref_bf16 = actor_forward_ref(x, params, compute_dtype=jnp.bfloat16)
    ref_f32 = actor_forward_ref(x, params, compute_dtype=jnp.float32)

    assert probs_full.shape == (batch, LANE)
    assert bool(jnp.all(probs_full[:, n_act:] == 0.0))            # pad lanes zero
    assert jnp.allclose(probs, ref_bf16, atol=5e-3, rtol=5e-3)    # same bf16 math
    assert jnp.allclose(probs, ref_f32, atol=5e-2, rtol=5e-2)     # vs full f32
    assert jnp.allclose(jnp.sum(probs_full, axis=-1), 1.0, atol=5e-3)
    assert bool(jnp.all(probs_full >= 0.0))

    # TODO(synk): torch.distributions.Categorical sampling/log_prob is host-side
    # bookkeeping over `probs`; the kernel returns the distribution parameters.
    print("KERNEL_OK")
</pallas_src>

<mosaic_0001>
module attributes {stable_mosaic.version = 11 : i64} {
  func.func @actor_kernel(%arg0: i32, %arg1: memref<8x32xf32, #tpu.memory_space<vmem>>, %arg2: memref<32x128xbf16, #tpu.memory_space<vmem>>, %arg3: memref<128x128xbf16, #tpu.memory_space<vmem>>, %arg4: memref<128x128xbf16, #tpu.memory_space<vmem>>, %arg5: memref<8x128xf32, #tpu.memory_space<vmem>>, %arg6: memref<8x128xf32, #tpu.memory_space<vmem>>) attributes {dimension_semantics = [#tpu.dimension_semantics<parallel>], iteration_bounds = array<i64: 1>, scalar_prefetch = 0 : i64, scratch_operands = 0 : i64, tpu.core_type = #tpu.core_type<tc>, window_params = [{transform_indices = @transform_0, window_bounds = array<i64: 8, 32>}, {pipeline_mode = #tpu.pipeline_mode<synchronous>, transform_indices = @transform_1, window_bounds = array<i64: 32, 128>}, {pipeline_mode = #tpu.pipeline_mode<synchronous>, transform_indices = @transform_2, window_bounds = array<i64: 128, 128>}, {pipeline_mode = #tpu.pipeline_mode<synchronous>, transform_indices = @transform_3, window_bounds = array<i64: 128, 128>}, {pipeline_mode = #tpu.pipeline_mode<synchronous>, transform_indices = @transform_4, window_bounds = array<i64: 8, 128>}, {transform_indices = @transform_5, window_bounds = array<i64: 8, 128>}]} {
    %c0 = arith.constant 0 : index
    %c0_0 = arith.constant 0 : index
    %0 = vector.load %arg5[%c0, %c0_0] : memref<8x128xf32, #tpu.memory_space<vmem>>, vector<1x128xf32>
    %c1 = arith.constant 1 : index
    %c0_1 = arith.constant 0 : index
    %1 = vector.load %arg5[%c1, %c0_1] : memref<8x128xf32, #tpu.memory_space<vmem>>, vector<1x128xf32>
    %c2 = arith.constant 2 : index
    %c0_2 = arith.constant 0 : index
    %2 = vector.load %arg5[%c2, %c0_2] : memref<8x128xf32, #tpu.memory_space<vmem>>, vector<1x128xf32>
    %c0_3 = arith.constant 0 : index
    %c0_4 = arith.constant 0 : index
    %3 = vector.load %arg1[%c0_3, %c0_4] : memref<8x32xf32, #tpu.memory_space<vmem>>, vector<8x32xf32>
    %4 = arith.truncf %3 : vector<8x32xf32> to vector<8x32xbf16>
    %c0_5 = arith.constant 0 : index
    %c0_6 = arith.constant 0 : index
    %5 = vector.load %arg2[%c0_5, %c0_6] : memref<32x128xbf16, #tpu.memory_space<vmem>>, vector<32x128xbf16>
    %cst = arith.constant dense<0.000000e+00> : vector<8x128xf32>
    %6 = tpu.matmul %4, %5, %cst {dimension_numbers = #tpu.dot_dimension_numbers<[1], [0], [0], [1], [0, 0, 1, 1], [], []>} : vector<8x32xbf16>, vector<32x128xbf16>, vector<8x128xf32> -> vector<8x128xf32>
    %7 = vector.broadcast %0 : vector<1x128xf32> to vector<8x128xf32>
    %8 = arith.addf %6, %7 : vector<8x128xf32>
    %cst_7 = arith.constant 0.000000e+00 : f32
    %9 = vector.broadcast %cst_7 : f32 to vector<8x128xf32>
    %10 = arith.maximumf %8, %9 : vector<8x128xf32>
    %11 = arith.truncf %10 : vector<8x128xf32> to vector<8x128xbf16>
    %c0_8 = arith.constant 0 : index
    %c0_9 = arith.constant 0 : index
    %12 = vector.load %arg3[%c0_8, %c0_9] : memref<128x128xbf16, #tpu.memory_space<vmem>>, vector<128x128xbf16>
    %cst_10 = arith.constant dense<0.000000e+00> : vector<8x128xf32>
    %13 = tpu.matmul %11, %12, %cst_10 {dimension_numbers = #tpu.dot_dimension_numbers<[1], [0], [0], [1], [0, 0, 1, 1], [], []>} : vector<8x128xbf16>, vector<128x128xbf16>, vector<8x128xf32> -> vector<8x128xf32>
    %14 = vector.broadcast %1 : vector<1x128xf32> to vector<8x128xf32>
    %15 = arith.addf %13, %14 : vector<8x128xf32>
    %cst_11 = arith.constant 0.000000e+00 : f32
    %16 = vector.broadcast %cst_11 : f32 to vector<8x128xf32>
    %17 = arith.maximumf %15, %16 : vector<8x128xf32>
    %18 = arith.truncf %17 : vector<8x128xf32> to vector<8x128xbf16>
    %c0_12 = arith.constant 0 : index
    %c0_13 = arith.constant 0 : index
    %19 = vector.load %arg4[%c0_12, %c0_13] : memref<128x128xbf16, #tpu.memory_space<vmem>>, vector<128x128xbf16>
    %cst_14 = arith.constant dense<0.000000e+00> : vector<8x128xf32>
    %20 = tpu.matmul %18, %19, %cst_14 {dimension_numbers = #tpu.dot_dimension_numbers<[1], [0], [0], [1], [0, 0, 1, 1], [], []>} : vector<8x128xbf16>, vector<128x128xbf16>, vector<8x128xf32> -> vector<8x128xf32>
    %21 = vector.broadcast %2 : vector<1x128xf32> to vector<8x128xf32>
    %22 = arith.addf %20, %21 : vector<8x128xf32>
    %cst_15 = arith.constant dense<0xFF800000> : vector<8xf32>
    %23 = vector.multi_reduction <maximumf>, %22, %cst_15 [1] : vector<8x128xf32> to vector<8xf32>
    %24 = vector.shape_cast %23 : vector<8xf32> to vector<8x1xf32>
    %25 = vector.broadcast %24 : vector<8x1xf32> to vector<8x128xf32>
    %26 = arith.subf %22, %25 : vector<8x128xf32>
    %27 = math.exp %26 : vector<8x128xf32>
    %cst_16 = arith.constant dense<0.000000e+00> : vector<8xf32>
    %28 = vector.multi_reduction <add>, %27, %cst_16 [1] : vector<8x128xf32> to vector<8xf32>
    %29 = vector.shape_cast %28 : vector<8xf32> to vector<8x1xf32>
    %30 = tpu.reciprocal %29 {approx = true} : vector<8x1xf32> -> vector<8x1xf32>
    %31 = vector.broadcast %30 : vector<8x1xf32> to vector<8x128xf32>
    %32 = arith.mulf %27, %31 : vector<8x128xf32>
    %c0_17 = arith.constant 0 : index
    %c0_18 = arith.constant 0 : index
    %33 = vector.load %arg6[%c0_17, %c0_18] : memref<8x128xf32, #tpu.memory_space<vmem>>, vector<8x128xf32>
    tpu.vector_store %arg6[%c0_17, %c0_18], %32 {strides = array<i32>} : memref<8x128xf32, #tpu.memory_space<vmem>>, vector<8x128xf32>,
    return
  }
  func.func @transform_0(%arg0: i32) -> (i32, i32) {
    %c0_i32 = arith.constant 0 : i32
    %c0_i32_0 = arith.constant 0 : i32
    return %arg0, %c0_i32 : i32, i32
  }
  func.func @transform_1(%arg0: i32) -> (i32, i32) {
    %c0_i32 = arith.constant 0 : i32
    %c0_i32_0 = arith.constant 0 : i32
    %c0_i32_1 = arith.constant 0 : i32
    return %c0_i32, %c0_i32_0 : i32, i32
  }
  func.func @transform_2(%arg0: i32) -> (i32, i32) {
    %c0_i32 = arith.constant 0 : i32
    %c0_i32_0 = arith.constant 0 : i32
    %c0_i32_1 = arith.constant 0 : i32
    return %c0_i32, %c0_i32_0 : i32, i32
  }
  func.func @transform_3(%arg0: i32) -> (i32, i32) {
    %c0_i32 = arith.constant 0 : i32
    %c0_i32_0 = arith.constant 0 : i32
    %c0_i32_1 = arith.constant 0 : i32
    return %c0_i32, %c0_i32_0 : i32, i32
  }
  func.func @transform_4(%arg0: i32) -> (i32, i32) {
    %c0_i32 = arith.constant 0 : i32
    %c0_i32_0 = arith.constant 0 : i32
    %c0_i32_1 = arith.constant 0 : i32
    return %c0_i32, %c0_i32_0 : i32, i32
  }
  func.func @transform_5(%arg0: i32) -> (i32, i32) {
    %c0_i32 = arith.constant 0 : i32
    %c0_i32_0 = arith.constant 0 : i32
    return %arg0, %c0_i32 : i32, i32
  }
}

</mosaic_0001>

<bundles_post_ra>
// kernel: actor_forward.1
= control target key start
LH: loop header
LB: loop body
LE: loop exit
PB: predicated region body
PF: predicated region fallthrough
CT: control target
= control target key end

     0   :  { %10 = vsyncpa [#allocation3], 0  ;;  %s638_s0 = inlined_call_operand.hbm [shape: f32[8,32], index: 0, kind: input, shape index: {}]   ;;  %s639_s1 = inlined_call_operand.hbm [shape: bf16[32,128], index: 1, kind: input, shape index: {}]   ;;  %s640_s2 = inlined_call_operand.hbm [shape: bf16[128,128], index: 2, kind: input, shape index: {}]   ;;  %s641_s3 = inlined_call_operand.hbm [shape: bf16[128,128], index: 3, kind: input, shape index: {}]   ;;  %s642_s4 = inlined_call_operand.hbm [shape: f32[8,128], index: 4, kind: input, shape index: {}]   ;;  %s643_s5 = inlined_call_operand.hbm [shape: f32[8,128], index: 5, kind: output, shape index: {}]  }
   0x1   :  { %11 = vsyncpa [#allocation6], 0 }
   0x2   :  { %12 = vsyncpa [#allocation9], 0  ;;  %s29_s20 = sshll.u32 %s639_s1, 4  ;;  %s30_s20 = int_to_ptr.hbm [resolvable:$true] %s29_s20 }
   0x3   :  { %13 = vsyncpa [#allocation4], 0  ;;  %s582_s21 = smov [#allocation5]   ;;  %s55_s25 = sshll.u32 %s641_s3, 4  ;;  %s56_s25 = int_to_ptr.hbm [resolvable:$true] %s55_s25 }
   0x4   :  { %s31_s22 = sshll.u32 %s582_s21, 4  ;;  %s583_s26 = smov 64   ;;  %s32_s22 = int_to_ptr.vmem [resolvable:$true] %s31_s22 }
   0x5   :  { %s584_s27 = smov 4   ;;  %s585_s28 = smov [#allocation8]  }
   0x6   :  { %37 = dma.hbm_to_vmem [thread:$0]  %s30_s20, 256, %s32_s22, [#allocation6], %s583_s26, %s583_s26, %s584_s27  }
   0x7   :  { %s57_s29 = sshll.u32 %s585_s28, 4  ;;  %s19_s7 = sshll.u32 %s638_s0, 4  ;;  %s58_s29 = int_to_ptr.vmem [resolvable:$true] %s57_s29  ;;  %s20_s7 = int_to_ptr.hbm [resolvable:$true] %s19_s7 }
   0x8   :  { %63 = dma.hbm_to_vmem [thread:$0]  %s56_s25, 1024, %s58_s29, [#allocation9], %s583_s26, %s583_s26, %s584_s27  }
   0x9   :  { %s42_s9 = sshll.u32 %s640_s2, 4  ;;  %s586_s10 = smov [#allocation2]   ;;  %s43_s9 = int_to_ptr.hbm [resolvable:$true] %s42_s9 }
   0xa   :  { %s21_s11 = sshll.u32 %s586_s10, 4  ;;  %s587_s3 = smov [#allocation7]   ;;  %s22_s11 = int_to_ptr.vmem [resolvable:$true] %s21_s11 }
   0xb   :  { %24 = dma.hbm_to_vmem [thread:$0]  %s20_s7, 128, %s22_s11, [#allocation3]  }
   0xc   :  { %s44_s12 = sshll.u32 %s587_s3, 4  ;;  %s69_s15 = sshll.u32 %s642_s4, 4  ;;  %s45_s12 = int_to_ptr.vmem [resolvable:$true] %s44_s12  ;;  %s70_s15 = int_to_ptr.hbm [resolvable:$true] %s69_s15 }
   0xd   :  { %50 = dma.hbm_to_vmem [thread:$0]  %s43_s9, 1024, %s45_s12, [#allocation6], %s583_s26, %s583_s26, %s584_s27  }
   0xe   :  { %s588_s0 = smov [#allocation10]  }
   0xf   :  { %s71_s16 = sshll.u32 %s588_s0, 4  ;;  %s72_s16 = int_to_ptr.vmem [resolvable:$true] %s71_s16 }
  0x10   :  { %74 = dma.hbm_to_vmem [thread:$0]  %s70_s15, 128, %s72_s16, [#allocation9]  }
  0x11   :  { %574 = dma.done.wait [#allocation3], 128  }
  0x12   :  { %575 = vsyncadd [#allocation3], 4294967168 }
  0x13   :  { %576 = dma.done.wait [#allocation6], 1280  }
  0x14   :  { %577 = vsyncadd [#allocation6], 4294966016 }
  0x15   :  { %578 = dma.done.wait [#allocation9], 1152  }
  0x16   :  { %579 = vsyncadd [#allocation9], 4294966144  ;;  %v398_v0 = vld [vmem:[#allocation5 + $0x8] sm:$0xff]  ;;  %v397_v2 = vld [vmem:[#allocation5] sm:$0xff]  ;;  %vm118_vm0 = vcmask 261120   ;;  %s589_s2 = smov [#allocation11]  }
  0x17   :  { %v406_v1 = vld [vmem:[#allocation7 + $0x38] sm:$0xff]  ;;  %128 = vmatpush.bf16.msra.mxu0 %v398_v0  ;;  %v99_v3 = vld [vmem:[#allocation2] sm:$0xff]  ;;  %v405_v4 = vld [vmem:[#allocation7 + $0x30] sm:$0xff]  ;;  %s310_s4 = sshll.u32 %s589_s2, 4  ;;  %s312_s19 = sshll.u32 %s643_s5, 4  ;;  %s311_s4 = int_to_ptr.vmem [resolvable:$true] %s310_s4  ;;  %s313_s19 = int_to_ptr.hbm [resolvable:$true] %s312_s19 }
  0x18   :  { %202 = vmatpush.bf16.msra.mxu1 %v406_v1  ;;  %v100_v5 = vpack.c.bf16 %v99_v3, %v99_v3  ;;  %v404_v6 = vld [vmem:[#allocation7 + $0x28] sm:$0xff]  ;;  %v403_v7 = vld [vmem:[#allocation7 + $0x20] sm:$0xff]  ;;  %v402_v8 = vld [vmem:[#allocation7 + $0x18] sm:$0xff] }
  0x19   :  { %v401_v9 = vld [vmem:[#allocation7 + $0x10] sm:$0xff]  ;;  %v400_v10 = vld [vmem:[#allocation7 + $0x8] sm:$0xff]  ;;  %v399_v11 = vld [vmem:[#allocation7] sm:$0xff] }
  0x1a   :  { %v414_v12 = vld [vmem:[#allocation8 + $0x38] sm:$0xff]  ;;  %v413_v13 = vld [vmem:[#allocation8 + $0x30] sm:$0xff]  ;;  %v412_v14 = vld [vmem:[#allocation8 + $0x28] sm:$0xff] }
  0x1b   :  { %129 = vmatpush.bf16.msra.mxu0 %v397_v2  ;;  %282 = vmatpush.bf16.msra.mxu2 %v414_v12  ;;  %v411_v15 = vld [vmem:[#allocation8 + $0x20] sm:$0xff]  ;;  %v410_v16 = vld [vmem:[#allocation8 + $0x18] sm:$0xff]  ;;  %v409_v17 = vld [vmem:[#allocation8 + $0x10] sm:$0xff] }
  0x1c   :  { %203 = vmatpush.bf16.msra.mxu1 %v405_v4  ;;  %v423_v18 = vld [vmem:[#allocation10] ss:$0 sm:$0xff]  ;;  %v408_v24 = vld [vmem:[#allocation8 + $0x8] sm:$0xff]  ;;  %v424_v26 = vld [vmem:[#allocation10 + $0x1] ss:$0 sm:$0xff] }
  0x1d   :  { %v407_v25 = vld [vmem:[#allocation8] sm:$0xff] }
  0x1e   :  { %332 = vmatmul.msk.bf16.vlgmr.msra.gmra.mxu0 %vm118_vm0, %v100_v5  ;;  %v425_v32 = vld [vmem:[#allocation10 + $0x2] ss:$0 sm:$0xff] }
  0x1f   :  { %283 = vmatpush.bf16.msra.mxu2 %v413_v13 }
  0x20   :  { %204 = vmatpush.bf16.msra.mxu1 %v404_v6 }
  0x23   :  { %284 = vmatpush.bf16.msra.mxu2 %v412_v14 }
  0x24   :  { %205 = vmatpush.bf16.msra.mxu1 %v403_v7 }
  0x27   :  { %285 = vmatpush.bf16.msra.mxu2 %v411_v15 }
  0x28   :  { %206 = vmatpush.bf16.msra.mxu1 %v402_v8 }
  0x2b   :  { %286 = vmatpush.bf16.msra.mxu2 %v410_v16 }
  0x2c   :  { %207 = vmatpush.bf16.msra.mxu1 %v401_v9 }
  0x2f   :  { %287 = vmatpush.bf16.msra.mxu2 %v409_v17 }
  0x30   :  { %208 = vmatpush.bf16.msra.mxu1 %v400_v10 }
  0x33   :  { %288 = vmatpush.bf16.msra.mxu2 %v408_v24 }
  0x34   :  { %209 = vmatpush.bf16.msra.mxu1 %v399_v11 }
  0x37   :  { %289 = vmatpush.bf16.msra.mxu2 %v407_v25 }
  0x9b   :  { %v131_v19 = vpop.f32.mrf.mxu0 }
  0x9c   :  { %v132_v20 = vadd.f32 %v423_v18, %v131_v19 }
  0x9e   :  { %v135_v21 = vmax.f32 %v132_v20, 0.0 }
  0xa0   :  { %v136_v22 = vpack.c.bf16 %v135_v21, %v135_v21 }
  0xa2   :  { %210 = vmatmul.bf16.vlgmr.msra.gmra.mxu1 %v136_v22 }
  0xa3   :  { %v133_v23 = vpop.f32.mrf.mxu0 }
 0x11f   :  { %v211_v27 = vpop.f32.mrf.mxu1 }
 0x120   :  { %v212_v28 = vadd.f32 %v424_v26, %v211_v27 }
 0x122   :  { %v215_v29 = vmax.f32 %v212_v28, 0.0 }
 0x124   :  { %v216_v30 = vpack.c.bf16 %v215_v29, %v215_v29 }
 0x126   :  { %290 = vmatmul.bf16.vlgmr.msra.gmra.mxu2 %v216_v30 }
 0x127   :  { %v213_v31 = vpop.f32.mrf.mxu1 }
 0x1a9   :  { %v291_v33 = vpop.f32.mrf.mxu2 }
 0x1aa   :  { %v292_v34 = vadd.f32 %v425_v32, %v291_v33 }
 0x1ac   :  { %295 = vmax.xlane.f32.xlu0 %v292_v34 }
 0x1b1   :  { %v293_v35 = vpop.f32.mrf.mxu2 }
 0x21f   :  { %v296_v36 = vpop.xlane.xlu0 %295 }
 0x220   :  { %v297_v37 = vsub.f32 %v292_v34, %v296_v36 }
 0x222   :  { %v298_v38 = vmul.f32 1.442695, %v297_v37 }
 0x224   :  { %426 = vpow2.f32 %v298_v38 }
 0x22a   :  { %v427_v39 = vpop.eup %426 }
 0x22b   :  { %300 = vadd.xlane.f32.xlu0 %v427_v39 }
 0x29e   :  { %v301_v40 = vpop.xlane.xlu0 %300 }
 0x29f   :  { %428 = vrcp.f32 %v301_v40 }
 0x2a5   :  { %v429_v41 = vpop.eup %428 }
 0x2a6   :  { %v303_v42 = vmul.f32 %v429_v41, %v427_v39 }
 0x2a8   :  { %304 = vst [vmem:[#allocation11] sm:$0xff] %v303_v42 }
 0x2a9   :  { %315 = dma.vmem_to_hbm [thread:$0]  %s311_s4, 128, %s313_s19, [#allocation4]  }
 0x2aa   :  { %580 = dma.done.wait [#allocation4], 128  }
 0x2ab   :  { %581 = vsyncadd [#allocation4], 4294967168 }
 0x2ac   :  { %320 = vsyncpa [#allocation3], 1 }
 0x2ad   :  { %321 = vsyncpa [#allocation6], 1 }
 0x2ae   :  { %322 = vsyncpa [#allocation9], 1 }
 0x2af   :  { %323 = vsyncpa [#allocation4], 1 }

</bundles_post_ra>
